<compile_context>
chip_gen: v7x
topology: tpu7x:2x2x1
jax: 0.10.0
libtpu: 0.0.40
codegen_flags: <defaults>
</compile_context>

<pallas_src>
import jax
import jax.numpy as jnp
import numpy as np
from jax.experimental import pallas as pl
from jax.experimental.pallas import tpu as pltpu

B, E, H, V = 8, 32, 32, 16          # batch, embedding_size, hidden_size, output_size (vocab)
GW = 4 * H                          # fused GRU-lane width: [ r | z | gi_n | gh_n ] = 128
NEG = -1e30                         # logit mask for padded output lanes


def decoder_seq_kernel(tok_ref, h0_ref, emb_ref, w_ref, b_ref,   # inputs
                       logp_ref, hT_ref,                          # outputs
                       act_ref):                                  # scratch (B, E+H) f32
    t = pl.program_id(0)

    # Initialize the carried hidden state from the provided h0 on the first step only.
    @pl.when(t == 0)
    def _():
        act_ref[:, E:] = h0_ref[...]

    # Embedding gather via one-hot matmul against the VMEM-resident table (exact row select),
    # eval-mode dropout is identity, then ReLU (as in forward()).
    tok = tok_ref[0]                                                        # (B, 1) int32
    onehot = (tok == jax.lax.broadcasted_iota(jnp.int32, (B, V), 1)).astype(jnp.float32)
    x = jnp.dot(onehot, emb_ref[...], preferred_element_type=jnp.float32)   # (B, E) f32
    act_ref[:, :E] = jnp.maximum(x, 0.0)

    a = act_ref[...]                                                        # (B, E+H) f32
    h_prev = a[:, E:]                                                       # (B, H)

    biases = b_ref[...]                                                     # (2, 128) f32
    b_gru = biases[0:1, :]
    b_out = biases[1:2, :]

    # Fused GRU matmul: (B,64) @ (64,128) -> lanes [ r_pre | z_pre | gi_n | gh_n ].
    g = jnp.dot(a.astype(jnp.bfloat16), w_ref[:E + H, :],
                preferred_element_type=jnp.float32) + b_gru                 # (B, 128) f32

    rz = jax.nn.sigmoid(g[:, :2 * H])                   # one EUP pass over the r|z lanes
    r = rz[:, :H]
    z = rz[:, H:2 * H]
    n = jnp.tanh(g[:, 2 * H:3 * H] + r * g[:, 3 * H:4 * H])
    h_new = (1.0 - z) * n + z * h_prev                                      # (B, H) f32

    # Output projection (padded to 128 lanes; padded lanes carry a -1e30 bias so they vanish
    # from the log_softmax max/sum) followed by log_softmax(dim=1).
    logits = jnp.dot(h_new.astype(jnp.bfloat16), w_ref[E + H:, :],
                     preferred_element_type=jnp.float32) + b_out            # (B, 128) f32
    m = jnp.max(logits, axis=1, keepdims=True)
    shifted = logits - m
    logp = shifted - jnp.log(jnp.sum(jnp.exp(shifted), axis=1, keepdims=True))

    logp_ref[0] = logp[:, :V]        # per-step (B, V) store (single masked vst, negligible)
    act_ref[:, E:] = h_new           # carry hidden state to the next grid step
    hT_ref[...] = h_new              # resident output; written back to HBM once at the end


def decoder_forward_seq(tokens_seq, hidden, p):
    """Run T Decoder.forward steps in one pallas_call. tokens_seq: (T, B) int32,
    hidden: (numLayers=1, B, H) f32. Returns (logp (T,B,V), final hidden (1,B,H))."""
    T = tokens_seq.shape[0]
    tok3 = tokens_seq.reshape(T, B, 1).astype(jnp.int32)
    h0 = hidden[0]

    grid_spec = pltpu.PrefetchScalarGridSpec(
        num_scalar_prefetch=0,
        grid=(T,),
        in_specs=[
            pl.BlockSpec((1, B, 1), lambda t: (t, 0, 0)),          # token ids, streamed per step
            pl.BlockSpec((B, H), lambda t: (0, 0)),                # initial hidden, resident
            pl.BlockSpec((V, E), lambda t: (0, 0)),                # embedding table, resident
            pl.BlockSpec((E + 2 * H, GW), lambda t: (0, 0)),       # fused GRU + out weights, resident
            pl.BlockSpec((2, GW), lambda t: (0, 0)),               # fused bias slab, resident
        ],
        out_specs=[
            pl.BlockSpec((1, B, V), lambda t: (t, 0, 0)),          # per-step log-probs
            pl.BlockSpec((B, H), lambda t: (0, 0)),                # final hidden, resident
        ],
        scratch_shapes=[pltpu.VMEM((B, E + H), jnp.float32)],      # [ x | h ] carry buffer
    )

    logp, hT = pl.pallas_call(
        decoder_seq_kernel,
        grid_spec=grid_spec,
        out_shape=(jax.ShapeDtypeStruct((T, B, V), jnp.float32),
                   jax.ShapeDtypeStruct((B, H), jnp.float32)),
        compiler_params=pltpu.CompilerParams(
            dimension_semantics=("arbitrary",)),                   # sequential hidden-state carry
    )(tok3, h0, p["emb"], p["w_all"], p["b_all"])
    return logp, hT[None]


def decoder_forward(input_tokens, hidden, p):
    """Original Decoder.forward semantics (one step): returns (log_softmax(out(gru_out[0])), hidden)."""
    logp, hT = decoder_forward_seq(input_tokens.reshape(1, B), hidden, p)
    return logp[0], hT


def reference_forward_seq(tokens_seq, hidden, p):
    """Pure-JAX reference (unpacked per-gate weights) with the same bf16 MXU quantization."""
    raw = p["raw"]

    def mm(a, w):
        return jnp.dot(a.astype(jnp.bfloat16), w.astype(jnp.bfloat16),
                       preferred_element_type=jnp.float32)

    h = hidden[0]
    logps = []
    for t in range(tokens_seq.shape[0]):
        x = jax.nn.relu(raw["emb"][tokens_seq[t]])                  # dropout(eval) = identity
        gi_r = mm(x, raw["w_ih_r"]) + raw["b_ih_r"]
        gi_z = mm(x, raw["w_ih_z"]) + raw["b_ih_z"]
        gi_n = mm(x, raw["w_ih_n"]) + raw["b_ih_n"]
        gh_r = mm(h, raw["w_hh_r"]) + raw["b_hh_r"]
        gh_z = mm(h, raw["w_hh_z"]) + raw["b_hh_z"]
        gh_n = mm(h, raw["w_hh_n"]) + raw["b_hh_n"]
        r = jax.nn.sigmoid(gi_r + gh_r)
        z = jax.nn.sigmoid(gi_z + gh_z)
        n = jnp.tanh(gi_n + r * gh_n)
        h = (1.0 - z) * n + z * h
        logits = mm(h, raw["w_out"]) + raw["b_out"]
        logps.append(jax.nn.log_softmax(logits, axis=1))
    return jnp.stack(logps), h[None]


def init_params(key):
    ks = jax.random.split(key, 15)
    s = 0.1

    def rnd(k, shape):
        return s * jax.random.normal(k, shape, jnp.float32)

    raw = {
        "emb": rnd(ks[0], (V, E)),
        "w_ih_r": rnd(ks[1], (E, H)), "w_ih_z": rnd(ks[2], (E, H)), "w_ih_n": rnd(ks[3], (E, H)),
        "w_hh_r": rnd(ks[4], (H, H)), "w_hh_z": rnd(ks[5], (H, H)), "w_hh_n": rnd(ks[6], (H, H)),
        "b_ih_r": rnd(ks[7], (1, H)), "b_ih_z": rnd(ks[8], (1, H)), "b_ih_n": rnd(ks[9], (1, H)),
        "b_hh_r": rnd(ks[10], (1, H)), "b_hh_z": rnd(ks[11], (1, H)), "b_hh_n": rnd(ks[12], (1, H)),
        "w_out": rnd(ks[13], (H, V)), "b_out": rnd(ks[14], (1, V)),
    }

    # Pack ONCE in the wrapper (not per call):
    # fused GRU weight (E+H, 4H) with lane layout [ r | z | gi_n | gh_n ],
    # out weight zero-padded to (H, 4H), stacked into one (E+2H, 4H) bf16 ref.
    zEH = jnp.zeros((E, H), jnp.float32)
    zHH = jnp.zeros((H, H), jnp.float32)
    w_gru = jnp.concatenate([
        jnp.concatenate([raw["w_ih_r"], raw["w_ih_z"], raw["w_ih_n"], zEH], axis=1),
        jnp.concatenate([raw["w_hh_r"], raw["w_hh_z"], zHH, raw["w_hh_n"]], axis=1),
    ], axis=0)                                                              # (E+H, 4H)
    w_out_pad = jnp.concatenate(
        [raw["w_out"], jnp.zeros((H, GW - V), jnp.float32)], axis=1)        # (H, 4H)
    w_all = jnp.concatenate([w_gru, w_out_pad], axis=0).astype(jnp.bfloat16)  # (96, 128) bf16

    # Fused bias slab (2, 4H): row0 GRU biases (r/z pre-summed), row1 out bias + -inf-ish pad.
    b_gru = jnp.concatenate([raw["b_ih_r"] + raw["b_hh_r"],
                             raw["b_ih_z"] + raw["b_hh_z"],
                             raw["b_ih_n"], raw["b_hh_n"]], axis=1)         # (1, 4H)
    b_out_pad = jnp.concatenate(
        [raw["b_out"], jnp.full((1, GW - V), NEG, jnp.float32)], axis=1)    # (1, 4H)
    b_all = jnp.concatenate([b_gru, b_out_pad], axis=0)                     # (2, 4H) f32

    return {"raw": raw, "emb": raw["emb"], "w_all": w_all, "b_all": b_all}


if __name__ == "__main__":
    key = jax.random.PRNGKey(0)
    k_par, k_tok, k_hid = jax.random.split(key, 3)
    params = init_params(k_par)

    T = 8
    tokens_seq = jax.random.randint(k_tok, (T, B), 0, V, dtype=jnp.int32)   # decoder input ids
    hidden0 = jax.random.normal(k_hid, (1, B, H), jnp.float32)              # (numLayers, B, H)

    # Amortized multi-step decode: one pallas_call for all T steps.
    logp_seq, h_final = decoder_forward_seq(tokens_seq, hidden0, params)
    jax.block_until_ready((logp_seq, h_final))

    ref_logp, ref_h = reference_forward_seq(tokens_seq, hidden0, params)
    np.testing.assert_allclose(np.asarray(logp_seq), np.asarray(ref_logp), rtol=2e-3, atol=2e-3)
    np.testing.assert_allclose(np.asarray(h_final), np.asarray(ref_h), rtol=2e-3, atol=2e-3)

    # Single-step call with the original Decoder.forward signature (T=1 grid).
    logp1, h1 = decoder_forward(tokens_seq[0], hidden0, params)
    jax.block_until_ready((logp1, h1))
    ref_logp1, ref_h1 = reference_forward_seq(tokens_seq[:1], hidden0, params)
    np.testing.assert_allclose(np.asarray(logp1), np.asarray(ref_logp1[0]), rtol=2e-3, atol=2e-3)
    np.testing.assert_allclose(np.asarray(h1), np.asarray(ref_h1), rtol=2e-3, atol=2e-3)

    print("KERNEL_OK")
</pallas_src>

<mosaic_0001>
module attributes {stable_mosaic.version = 11 : i64} {
  func.func @decoder_seq_kernel(%arg0: i32, %arg1: memref<1x8x1xi32, #tpu.memory_space<vmem>>, %arg2: memref<8x32xf32, #tpu.memory_space<vmem>>, %arg3: memref<16x32xf32, #tpu.memory_space<vmem>>, %arg4: memref<96x128xbf16, #tpu.memory_space<vmem>>, %arg5: memref<2x128xf32, #tpu.memory_space<vmem>>, %arg6: memref<1x8x16xf32, #tpu.memory_space<vmem>>, %arg7: memref<8x32xf32, #tpu.memory_space<vmem>>, %arg8: memref<8x64xf32, #tpu.memory_space<vmem>>) attributes {dimension_semantics = [#tpu.dimension_semantics<arbitrary>], iteration_bounds = array<i64: 8>, scalar_prefetch = 0 : i64, scratch_operands = 1 : i64, tpu.core_type = #tpu.core_type<tc>, window_params = [{transform_indices = @transform_0, window_bounds = array<i64: 1, 8, 1>}, {pipeline_mode = #tpu.pipeline_mode<synchronous>, transform_indices = @transform_1, window_bounds = array<i64: 8, 32>}, {pipeline_mode = #tpu.pipeline_mode<synchronous>, transform_indices = @transform_2, window_bounds = array<i64: 16, 32>}, {pipeline_mode = #tpu.pipeline_mode<synchronous>, transform_indices = @transform_3, window_bounds = array<i64: 96, 128>}, {pipeline_mode = #tpu.pipeline_mode<synchronous>, transform_indices = @transform_4, window_bounds = array<i64: 2, 128>}, {transform_indices = @transform_5, window_bounds = array<i64: 1, 8, 16>}, {pipeline_mode = #tpu.pipeline_mode<synchronous>, transform_indices = @transform_6, window_bounds = array<i64: 8, 32>}]} {
    %c0_i32 = arith.constant 0 : i32
    %0 = arith.cmpi eq, %arg0, %c0_i32 : i32
    %1 = arith.extui %0 : i1 to i32
    %c0_i32_0 = arith.constant 0 : i32
    %2 = arith.cmpi ne, %1, %c0_i32_0 : i32
    scf.if %2 {
      %c0_27 = arith.constant 0 : index
      %c0_28 = arith.constant 0 : index
      %64 = vector.load %arg2[%c0_27, %c0_28] : memref<8x32xf32, #tpu.memory_space<vmem>>, vector<8x32xf32>
      %c0_29 = arith.constant 0 : index
      %c32_30 = arith.constant 32 : index
      %65 = vector.load %arg8[%c0_29, %c32_30] : memref<8x64xf32, #tpu.memory_space<vmem>>, vector<8x32xf32>
      tpu.vector_store %arg8[%c0_29, %c32_30], %64 {strides = array<i32>} : memref<8x64xf32, #tpu.memory_space<vmem>>, vector<8x32xf32>,
    } else {
    }
    %c0 = arith.constant 0 : index
    %c0_1 = arith.constant 0 : index
    %c0_2 = arith.constant 0 : index
    %3 = vector.load %arg1[%c0, %c0_1, %c0_2] : memref<1x8x1xi32, #tpu.memory_space<vmem>>, vector<1x8x1xi32>
    %4 = vector.shape_cast %3 : vector<1x8x1xi32> to vector<8x1xi32>
    %5 = tpu.iota {dimensions = array<i32: 1>} : vector<8x16xi32>
    %6 = vector.broadcast %4 : vector<8x1xi32> to vector<8x16xi32>
    %7 = arith.cmpi eq, %6, %5 : vector<8x16xi32>
    %8 = arith.extui %7 : vector<8x16xi1> to vector<8x16xi32>
    %9 = arith.sitofp %8 : vector<8x16xi32> to vector<8x16xf32>
    %c0_3 = arith.constant 0 : index
    %c0_4 = arith.constant 0 : index
    %10 = vector.load %arg3[%c0_3, %c0_4] : memref<16x32xf32, #tpu.memory_space<vmem>>, vector<16x32xf32>
    %cst = arith.constant dense<0.000000e+00> : vector<8x32xf32>
    %11 = tpu.matmul %9, %10, %cst {dimension_numbers = #tpu.dot_dimension_numbers<[1], [0], [0], [1], [0, 0, 1, 1], [], []>} : vector<8x16xf32>, vector<16x32xf32>, vector<8x32xf32> -> vector<8x32xf32>
    %cst_5 = arith.constant 0.000000e+00 : f32
    %12 = vector.broadcast %cst_5 : f32 to vector<8x32xf32>
    %13 = arith.maximumf %11, %12 : vector<8x32xf32>
    %c0_6 = arith.constant 0 : index
    %c0_7 = arith.constant 0 : index
    %14 = vector.load %arg8[%c0_6, %c0_7] : memref<8x64xf32, #tpu.memory_space<vmem>>, vector<8x32xf32>
    tpu.vector_store %arg8[%c0_6, %c0_7], %13 {strides = array<i32>} : memref<8x64xf32, #tpu.memory_space<vmem>>, vector<8x32xf32>,
    %c0_8 = arith.constant 0 : index
    %c0_9 = arith.constant 0 : index
    %15 = vector.load %arg8[%c0_8, %c0_9] : memref<8x64xf32, #tpu.memory_space<vmem>>, vector<8x64xf32>
    %16 = vector.extract_strided_slice %15 {offsets = [0, 32], sizes = [8, 32], strides = [1, 1]} : vector<8x64xf32> to vector<8x32xf32>
    %c0_10 = arith.constant 0 : index
    %c0_11 = arith.constant 0 : index
    %17 = vector.load %arg5[%c0_10, %c0_11] : memref<2x128xf32, #tpu.memory_space<vmem>>, vector<2x128xf32>
    %18 = vector.extract_strided_slice %17 {offsets = [0, 0], sizes = [1, 128], strides = [1, 1]} : vector<2x128xf32> to vector<1x128xf32>
    %19 = vector.extract_strided_slice %17 {offsets = [1, 0], sizes = [1, 128], strides = [1, 1]} : vector<2x128xf32> to vector<1x128xf32>
    %20 = arith.truncf %15 : vector<8x64xf32> to vector<8x64xbf16>
    %c0_12 = arith.constant 0 : index
    %c0_13 = arith.constant 0 : index
    %21 = vector.load %arg4[%c0_12, %c0_13] : memref<96x128xbf16, #tpu.memory_space<vmem>>, vector<64x128xbf16>
    %cst_14 = arith.constant dense<0.000000e+00> : vector<8x128xf32>
    %22 = tpu.matmul %20, %21, %cst_14 {dimension_numbers = #tpu.dot_dimension_numbers<[1], [0], [0], [1], [0, 0, 1, 1], [], []>} : vector<8x64xbf16>, vector<64x128xbf16>, vector<8x128xf32> -> vector<8x128xf32>
    %23 = vector.broadcast %18 : vector<1x128xf32> to vector<8x128xf32>
    %24 = arith.addf %22, %23 : vector<8x128xf32>
    %25 = vector.extract_strided_slice %24 {offsets = [0, 0], sizes = [8, 64], strides = [1, 1]} : vector<8x128xf32> to vector<8x64xf32>
    %26 = arith.negf %25 : vector<8x64xf32>
    %27 = math.exp %26 : vector<8x64xf32>
    %cst_15 = arith.constant 1.000000e+00 : f32
    %28 = vector.broadcast %cst_15 : f32 to vector<8x64xf32>
    %29 = arith.addf %28, %27 : vector<8x64xf32>
    %30 = arith.divf %28, %29 : vector<8x64xf32>
    %31 = vector.extract_strided_slice %30 {offsets = [0, 0], sizes = [8, 32], strides = [1, 1]} : vector<8x64xf32> to vector<8x32xf32>
    %32 = vector.extract_strided_slice %30 {offsets = [0, 32], sizes = [8, 32], strides = [1, 1]} : vector<8x64xf32> to vector<8x32xf32>
    %33 = vector.extract_strided_slice %24 {offsets = [0, 64], sizes = [8, 32], strides = [1, 1]} : vector<8x128xf32> to vector<8x32xf32>
    %34 = vector.extract_strided_slice %24 {offsets = [0, 96], sizes = [8, 32], strides = [1, 1]} : vector<8x128xf32> to vector<8x32xf32>
    %35 = arith.mulf %31, %34 : vector<8x32xf32>
    %36 = arith.addf %33, %35 : vector<8x32xf32>
    %37 = math.tanh %36 : vector<8x32xf32>
    %cst_16 = arith.constant 1.000000e+00 : f32
    %38 = vector.broadcast %cst_16 : f32 to vector<8x32xf32>
    %39 = arith.subf %38, %32 : vector<8x32xf32>
    %40 = arith.mulf %39, %37 : vector<8x32xf32>
    %41 = arith.mulf %32, %16 : vector<8x32xf32>
    %42 = arith.addf %40, %41 : vector<8x32xf32>
    %43 = arith.truncf %42 : vector<8x32xf32> to vector<8x32xbf16>
    %c64 = arith.constant 64 : index
    %c0_17 = arith.constant 0 : index
    %44 = vector.load %arg4[%c64, %c0_17] : memref<96x128xbf16, #tpu.memory_space<vmem>>, vector<32x128xbf16>
    %cst_18 = arith.constant dense<0.000000e+00> : vector<8x128xf32>
    %45 = tpu.matmul %43, %44, %cst_18 {dimension_numbers = #tpu.dot_dimension_numbers<[1], [0], [0], [1], [0, 0, 1, 1], [], []>} : vector<8x32xbf16>, vector<32x128xbf16>, vector<8x128xf32> -> vector<8x128xf32>
    %46 = vector.broadcast %19 : vector<1x128xf32> to vector<8x128xf32>
    %47 = arith.addf %45, %46 : vector<8x128xf32>
    %cst_19 = arith.constant dense<0xFF800000> : vector<8xf32>
    %48 = vector.multi_reduction <maximumf>, %47, %cst_19 [1] : vector<8x128xf32> to vector<8xf32>
    %49 = vector.shape_cast %48 : vector<8xf32> to vector<8x1xf32>
    %50 = vector.broadcast %49 : vector<8x1xf32> to vector<8x128xf32>
    %51 = arith.subf %47, %50 : vector<8x128xf32>
    %52 = math.exp %51 : vector<8x128xf32>
    %cst_20 = arith.constant dense<0.000000e+00> : vector<8xf32>
    %53 = vector.multi_reduction <add>, %52, %cst_20 [1] : vector<8x128xf32> to vector<8xf32>
    %54 = vector.shape_cast %53 : vector<8xf32> to vector<8x1xf32>
    %55 = math.log %54 : vector<8x1xf32>
    %56 = vector.broadcast %55 : vector<8x1xf32> to vector<8x128xf32>
    %57 = arith.subf %51, %56 : vector<8x128xf32>
    %58 = vector.extract_strided_slice %57 {offsets = [0, 0], sizes = [8, 16], strides = [1, 1]} : vector<8x128xf32> to vector<8x16xf32>
    %c0_21 = arith.constant 0 : index
    %c0_22 = arith.constant 0 : index
    %c0_23 = arith.constant 0 : index
    %59 = vector.load %arg6[%c0_21, %c0_22, %c0_23] : memref<1x8x16xf32, #tpu.memory_space<vmem>>, vector<1x8x16xf32>
    %60 = vector.shape_cast %59 : vector<1x8x16xf32> to vector<8x16xf32>
    %61 = vector.shape_cast %58 : vector<8x16xf32> to vector<1x8x16xf32>
    tpu.vector_store %arg6[%c0_21, %c0_22, %c0_23], %61 {strides = array<i32>} : memref<1x8x16xf32, #tpu.memory_space<vmem>>, vector<1x8x16xf32>,
    %c0_24 = arith.constant 0 : index
    %c32 = arith.constant 32 : index
    %62 = vector.load %arg8[%c0_24, %c32] : memref<8x64xf32, #tpu.memory_space<vmem>>, vector<8x32xf32>
    tpu.vector_store %arg8[%c0_24, %c32], %42 {strides = array<i32>} : memref<8x64xf32, #tpu.memory_space<vmem>>, vector<8x32xf32>,
    %c0_25 = arith.constant 0 : index
    %c0_26 = arith.constant 0 : index
    %63 = vector.load %arg7[%c0_25, %c0_26] : memref<8x32xf32, #tpu.memory_space<vmem>>, vector<8x32xf32>
    tpu.vector_store %arg7[%c0_25, %c0_26], %42 {strides = array<i32>} : memref<8x32xf32, #tpu.memory_space<vmem>>, vector<8x32xf32>,
    return
  }
  func.func @transform_0(%arg0: i32) -> (i32, i32, i32) {
    %c0_i32 = arith.constant 0 : i32
    %c0_i32_0 = arith.constant 0 : i32
    %c0_i32_1 = arith.constant 0 : i32
    return %arg0, %c0_i32, %c0_i32_0 : i32, i32, i32
  }
  func.func @transform_1(%arg0: i32) -> (i32, i32) {
    %c0_i32 = arith.constant 0 : i32
    %c0_i32_0 = arith.constant 0 : i32
    %c0_i32_1 = arith.constant 0 : i32
    return %c0_i32, %c0_i32_0 : i32, i32
  }
  func.func @transform_2(%arg0: i32) -> (i32, i32) {
    %c0_i32 = arith.constant 0 : i32
    %c0_i32_0 = arith.constant 0 : i32
    %c0_i32_1 = arith.constant 0 : i32
    return %c0_i32, %c0_i32_0 : i32, i32
  }
  func.func @transform_3(%arg0: i32) -> (i32, i32) {
    %c0_i32 = arith.constant 0 : i32
    %c0_i32_0 = arith.constant 0 : i32
    %c0_i32_1 = arith.constant 0 : i32
    return %c0_i32, %c0_i32_0 : i32, i32
  }
  func.func @transform_4(%arg0: i32) -> (i32, i32) {
    %c0_i32 = arith.constant 0 : i32
    %c0_i32_0 = arith.constant 0 : i32
    %c0_i32_1 = arith.constant 0 : i32
    return %c0_i32, %c0_i32_0 : i32, i32
  }
  func.func @transform_5(%arg0: i32) -> (i32, i32, i32) {
    %c0_i32 = arith.constant 0 : i32
    %c0_i32_0 = arith.constant 0 : i32
    %c0_i32_1 = arith.constant 0 : i32
    return %arg0, %c0_i32, %c0_i32_0 : i32, i32, i32
  }
  func.func @transform_6(%arg0: i32) -> (i32, i32) {
    %c0_i32 = arith.constant 0 : i32
    %c0_i32_0 = arith.constant 0 : i32
    %c0_i32_1 = arith.constant 0 : i32
    return %c0_i32, %c0_i32_0 : i32, i32
  }
}

</mosaic_0001>

<bundles_post_ra>
// kernel: tpu_custom_call.1
= control target key start
LH: loop header
LB: loop body
LE: loop exit
PB: predicated region body
PF: predicated region fallthrough
CT: control target
= control target key end

     0   :  { %12 = vsyncpa [#allocation4], 0  ;;  %s1080_s0 = inlined_call_operand.vmem [shape: s32[8,8,1], index: 0, kind: input, shape index: {}]   ;;  %s1081_s1 = inlined_call_operand.vmem [shape: f32[8,32], index: 1, kind: input, shape index: {}]   ;;  %s1082_s2 = inlined_call_operand.vmem [shape: f32[16,32], index: 2, kind: input, shape index: {}]   ;;  %s1083_s3 = inlined_call_operand.vmem [shape: bf16[96,128], index: 3, kind: input, shape index: {}]   ;;  %s1084_s4 = inlined_call_operand.vmem [shape: f32[2,128], index: 4, kind: input, shape index: {}]   ;;  %s1085_s5 = inlined_call_operand.hbm [shape: f32[8,8,16], index: 5, kind: output, shape index: {0}]   ;;  %s1086_s6 = inlined_call_operand.hbm [shape: f32[8,32], index: 6, kind: output, shape index: {1}]  }
   0x1   :  { %14 = vsyncpa [#allocation4 + $0x1], 0 }
   0x2   :  { %15 = vsyncpa [#allocation6], 0  ;;  %s909_s21 = smov 0   ;;  %s911_s22 = smov 0  }
   0x3   :  { %s913_s23 = smov 0   ;;  %s915_s24 = smov 0  }
   0x4 LB: > { %s930_s25 = sadd.s32 4294967295, %s862_s24   ;;  %s634_s26 = sadd.s32 4294967294, %s862_s24   ;;  %s862_s24 = sphi %s915_s24, %s1092_s24   ;;  %s858_s23 = sphi %s913_s23, %s1091_s23   ;;  %s854_s22 = sphi %s911_s22, %s1090_s22   ;;  %s850_s21 = sphi %s909_s21, %s1089_s21  }
   0x5   : > { %s934_s27 = sadd.s32 1, %s862_s24   ;;  %s138_s28 = sadd.s32 1, %s858_s23 }
   0x6   : > { %s135_s29 = ssub.s32 %s862_s24, %s934_s27  ;;  %p148_p0 = scmp.ne.s32.totalorder %s858_s23, %s854_s22 }
   0x7   : > { %p136_p1 = scmp.eq.s32.totalorder %s135_s29, 0  ;;  %p149_p2 = scmp.eq.s32.totalorder %s930_s25, 7 }
   0x8   : > { %p154_p3 = scmp.ne.s32.totalorder %s854_s22, %s850_s21  ;;  %p155_p4 = scmp.eq.s32.totalorder %s634_s26, 7 }
   0x9   : > { %s945_s30 = scalar_select %p136_p1, %s858_s23, %s138_s28  }
   0xa   : > { %p949_p5 = por %p149_p2, %p148_p0  ;;  %p953_p6 = por %p155_p4, %p154_p3 }
   0xb   : > { %p637_p7 = scmp.ge.s32.totalorder %s862_s24, 1  ;;  %p213_p8 = scmp.lt.s32.totalorder %s862_s24, 9 }
   0xd   : > { %p214_p9 = pnand %p637_p7, %p213_p8 }
   0xe   : > { %s237_s9 = sand.u32 (!%p214_p9), 1, %s854_s22   ;;  %p242_p10 = scmp.lt.s32.totalorder (!%p214_p9), %s930_s25, 7 }
   0xf   : > { %217 = sbr.rel (%p214_p9) target bundleno = 1747 (0x6d3), region = 40  ;;  %s963_s10 = sshll.u32 (!%p214_p9), %s237_s9, 3 }
  0x10   : > { %s239_s16 = scalar_lea.vmem (!%p214_p9), [#allocation3], %s963_s10  ;;  %p640_p11 = scmp.ne.s32.totalorder (!%p214_p9), %s930_s25, 0 }
  0x16   : > { %s243_s11 = scalar_select %p242_p10, %s930_s25, 7 }
  0x17   : > { %250 = sbr.rel (%p640_p11) target bundleno = 140 (0x8c), region = 44  ;;  %v251_v0 = vld [vmem:[%s1081_s1] sm:$0xff] (!%p640_p11)  ;;  %s864_s19 = smov (!%p640_p11), 32   ;;  %vm256_vm0 = vcmask (!%p640_p11), 523520  }
  0x18   : > { %s639_s12 = sshll.u32 %s243_s11, 3  ;;  %253 = vrot.lane.b32.xlu0 (!%p640_p11), %v251_v0, %s864_s19 }
  0x19   : > { %s245_s15 = scalar_lea.vmem %s1080_s0, %s639_s12 }
  0x8a   : > { %v254_v1 = vpop.permute.xlu0 %253 }
  0x8b   : > { %257 = vst.msk [vmem:[#allocation2] sm:$0xff] %vm256_vm0, %v254_v1 }
  0x8c PF: > { %v258_v2 = vld [vmem:[%s245_s15] sm:$0xff]  ;;  %v268_v4 = vld [vmem:[%s1082_s2 + $0x8] sm:$0xff]  ;;  %v865_v5 = vmov 0   ;;  %v866_v6 = vmov 0.0|0.0   ;;  %v867_v8 = vmov 0.0   ;;  %vm868_vm1 = vmmov 0  }
  0x8d   : > { %v267_v3 = vld [vmem:[%s1082_s2] sm:$0xff]  ;;  %753 = vset.pattern.permute.xlu0 %v865_v5  ;;  %696 = vmatprep.subr.bf16.mxu0 %v866_v6  ;;  %v259_v10 = vlaneseq  ;;  %vm269_vm2 = vcmask 130048   ;;  %v755_v14 = vld [vmem:[%s1083_s3 + $0x8] sm:$0xff]   ;;  %v756_v15 = vld [vmem:[%s1083_s3 + $0x10] sm:$0xff]   ;;  %vm344_vm4 = vcmask 261120   ;;  %vm385_vm5 = vcmask 523264  }
  0x8e   : > { %v697_v7 = vpack.c.bf16 %v268_v4, %v267_v3  ;;  %262 = vperm.xlu0 %753, %v258_v2   ;;  %676 = vmatprep.subr.bf16.mxu1 %v867_v8  ;;  %v754_v9 = vld [vmem:[%s1083_s3] sm:$0xff]   ;;  %v757_v16 = vld [vmem:[%s1083_s3 + $0x18] sm:$0xff]   ;;  %s869_s28 = smov 32   ;;  %s870_s29 = smov 64   ;;  %v759_v40 = vld [vmem:[%s1083_s3 + $0x28] sm:$0xff]   ;;  %vm532_vm6 = vcmask 523520  }
  0x8f   : > { %673 = vmatprep.mubr.msk.f32.mxu0 %vm868_vm1, %v867_v8  ;;  %684 = vmatprep.mubr.msk.bf16.mxu1 %vm868_vm1, %v867_v8  ;;  %v260_v11 = vand.u32 127, %v259_v10  ;;  %v358_v22 = vshrl.u32 %v259_v10, 7  ;;  %v347_v24 = vld [vmem:[%s1084_s4] sm:$0x3]  ;;  %s871_s15 = smov 96   ;;  %s872_s17 = smov [#allocation5]  }
  0x90   : > { %698 = vmatpush3.bf16.msra.mxu0 %v697_v7  ;;  %677 = vmatpush3.bf16.msra.mxu1 %v754_v9  ;;  %v758_v39 = vld [vmem:[%s1083_s3 + $0x20] sm:$0xff]   ;;  %s564_s18 = sshll.u32 %s872_s17, 4  ;;  %s565_s18 = int_to_ptr.vmem [resolvable:$true] %s564_s18 }
  0x91   : > { %688 = vmatprep.subr.bf16.mxu0 %v867_v8  ;;  %678 = vmatprep.subr.bf16.mxu1 %v867_v8  ;;  %v359_v23 = vsub.s32 0, %v358_v22  ;;  %v461_v49 = vsub.s32 1, %v358_v22  ;;  %s770_s19 = scalar_lea.vmem %s565_s18, 128  ;;  %p777_p1 = scmp.lt.s32.totalorder %s565_s18, %s565_s18 }
  0x92   : > { %p771_p12 = scmp.ne.s32.totalorder %s565_s18, %s770_s19  ;;  %p778_p3 = scmp.lt.s32.totalorder %s770_s19, %s770_s19 }
  0x93   : > { %v360_v25 = vrot.slane %v347_v24, %v359_v23  ;;  %v462_v50 = vrot.slane %v347_v24, %v461_v49 }
  0x94   : > { %679 = vmatpush3.bf16.msra.mxu1 %v755_v14  ;;  %p772_p13 = pnand %p771_p12, %p149_p2  ;;  %p779_p4 = por %p778_p3, %p777_p1 }
  0x95   : > { %680 = vmatprep.subr.bf16.mxu1 %v867_v8 }
  0x96   : > { %p773_p0 = pneg %p772_p13 }
  0x98   : > { %681 = vmatpush3.bf16.msra.mxu1 %v756_v15  ;;  %p780_p7 = pnand %p779_p4, %p773_p0 }
  0x99   : > { %682 = vmatprep.subr.bf16.mxu1 %v867_v8 }
  0x9c   : > { %683 = vmatpush3.bf16.msra.mxu1 %v757_v16 }
 0x10d   : > { %v263_v12 = vpop.permute.xlu0 %262 }
 0x10e   : > { %vm264_vm3 = vcmp.eq.s32.totalorder %v263_v12, %v260_v11 }
 0x10f   : > { %v641_v13 = vsel %vm264_vm3, 1.0, %v867_v8 }
 0x110   : > { %674 = vmatmul.mubr.msk.f32.vlgmr.msra.gmra.mrb[0].mxu0 %vm269_vm2, %v641_v13 }
 0x111   : > { %692 = vmatprep.mubr.msk.bf16.mxu0 %vm868_vm1, %v867_v8  ;;  %689 = vmatpush3.bf16.msra.mxu0 %v758_v39 }
 0x112   : > { %690 = vmatprep.subr.bf16.mxu0 %v867_v8 }
 0x115   : > { %691 = vmatpush3.bf16.msra.mxu0 %v759_v40 }
 0x1e3   : > { %v339_v17 = vpop.f32.mrb[0].mxu0 }
 0x1e4   : > { %v343_v18 = vmax.f32 %v339_v17, 0.0  ;;  %v675_v19 = vpop.f32.mrb[1].mxu0 }
 0x1e6   : > { %345 = vst.msk [vmem:[#allocation2] sm:$0xff] %vm344_vm4, %v343_v18 }
 0x1ed   : > { %v346_v20 = vld [vmem:[#allocation2] sm:$0xff] }
 0x1ee   : > { %v348_v21 = vpack.c.bf16 %v346_v20, %v346_v20 }
 0x1f0   : > { %685 = vmatmul.mubr.msk.bf16.vlgmr.msra.gmra.mrb[0].mxu1 %vm385_vm5, %v348_v21 }
 0x2c3   : > { %v423_v26 = vpop.f32.mrb[0].mxu1 }
 0x2c4   : > { %v424_v27 = vadd.f32 %v423_v26, %v360_v25  ;;  %v686_v28 = vpop.f32.mrb[1].mxu1 }
 0x2c5   : > { %v426_v29 = vpop.f32.mrb[2].mxu1 }
 0x2c6   : > { %436 = vrot.lane.b32.xlu0 %v424_v27, %s869_s28  ;;  %v687_v30 = vpop.f32.mrb[3].mxu1  ;;  %v648_v31 = vmul.f32 -1.442695, %v424_v27 }
 0x2c8   : > { %760 = vpow2.f32 %v648_v31 }
 0x2d2   : > { %v761_v32 = vpop.eup %760 }
 0x2d3   : > { %v432_v33 = vadd.f32 1.0, %v761_v32 }
 0x2d5   : > { %762 = vrcp.f32 %v432_v33 }
 0x2df   : > { %v763_v34 = vpop.eup %762 }
 0x2e0   : > { %v446_v42 = vsub.f32 1.0, %v763_v34  ;;  %v452_v44 = vmul.f32 %v763_v34, %v346_v20 }
 0x338   : > { %v437_v35 = vpop.permute.xlu0 %436 }
 0x339   : > { %v439_v36 = vmul.f32 %v763_v34, %v437_v35 }
 0x33b   : > { %441 = vrot.lane.b32.xlu1 %v439_v36, %s870_s29 }
 0x3ad   : > { %v442_v37 = vpop.permute.xlu1 %441 }
 0x3ae   : > { %v444_v38 = vadd.f32 %v442_v37, %v424_v27 }
 0x3b0   : > { %764 = vtanh.f32 %v444_v38 }
 0x3ba   : > { %v765_v41 = vpop.eup %764 }
 0x3bb   : > { %448 = vrot.lane.b32.xlu1 %v765_v41, %s871_s15 }
 0x42d   : > { %v449_v43 = vpop.permute.xlu1 %448 }
 0x42e   : > { %v451_v45 = vmul.f32 %v449_v43, %v446_v42 }
 0x430   : > { %v453_v46 = vadd.f32 %v452_v44, %v451_v45 }
 0x432   : > { %533 = vst.msk [vmem:[#allocation2] sm:$0xff] %vm532_vm6, %v453_v46  ;;  %v454_v47 = vpack.c.bf16 %v453_v46, %v453_v46 }
 0x434   : > { %464 = vrot.lane.b32.xlu0 %v454_v47, %s871_s15 }
 0x4a6   : > { %v465_v48 = vpop.permute.xlu0 %464 }
 0x4a7   : > { %693 = vmatmul.mubr.msk.bf16.vlgmr.msra.gmra.mrb[4].mxu0 %vm344_vm4, %v465_v48 }
 0x57a   : > { %v515_v51 = vpop.f32.mrb[4].mxu0 }
 0x57b   : > { %v516_v52 = vadd.f32 %v515_v51, %v462_v50  ;;  %v694_v53 = vpop.f32.mrb[5].mxu0 }
 0x57c   : > { %v518_v54 = vpop.f32.mrb[6].mxu0 }
 0x57d   : > { %521 = vmax.xlane.f32.xlu1 %v516_v52  ;;  %v695_v55 = vpop.f32.mrb[7].mxu0 }
 0x60a   : > { %v522_v56 = vpop.xlane.xlu1 %521 }
 0x60b   : > { %v523_v57 = vsub.f32 %v516_v52, %v522_v56 }
 0x60d   : > { %v524_v58 = vmul.f32 1.442695, %v523_v57 }
 0x60f   : > { %766 = vpow2.f32 %v524_v58 }
 0x619   : > { %v767_v59 = vpop.eup %766 }
 0x61a   : > { %526 = vadd.xlane.f32.xlu0 %v767_v59 }
 0x630   : > { %535 = vrot.lane.b32.xlu0 %v453_v46, %s871_s15 }
 0x6a7   : > { %v527_v60 = vpop.xlane.xlu0 %526 }
 0x6a8   : > { %768 = vlog2.f32 %v527_v60 }
 0x6ab   : > { %v536_v61 = vpop.permute.xlu0 %535 }
 0x6ac   : > { %538 = vst.msk [vmem:[#allocation5] sm:$0xff] %vm344_vm4, %v536_v61 }
 0x6ad   : > { %783 = shalt.err (!%p780_p7)
}
 0x6ae   : > { %s784_s28 = scalar_lea.hbm %s1086_s6, 128 }
 0x6af   : > { %p785_p8 = scmp.ne.s32.totalorder %s1086_s6, %s784_s28  ;;  %p790_p11 = scmp.lt.u32.totalorder %s784_s28, %s1086_s6 }
 0x6b1   : > { %p786_p9 = pnand %p785_p8, %p149_p2 }
 0x6b3   : > { %p787_p10 = pneg %p786_p9 }
 0x6b5   : > { %p792_p12 = pnand %p790_p11, %p787_p10 }
 0x6b7   : > { %795 = shalt.err (!%p792_p12)
}
 0x6b8   : > { %701 = dma.vmem_to_hbm [thread:$0]  (%p149_p2), %s565_s18, 128, %s1086_s6, [#allocation6]   ;;  %v769_v62 = vpop.eup %768 }
 0x6b9   : > { %s653_s17 = sshll.u32 %s930_s25, 7  ;;  %s553_s19 = sshll.u32 %s239_s16, 4  ;;  %v529_v63 = vmul.f32 0.6931472, %v769_v62  ;;  %s1031_s19 = int_to_ptr.vmem [resolvable:$true] %s553_s19 }
 0x6ba   : > { %s1029_s28 = scalar_lea.hbm %s1085_s5, %s653_s17  ;;  %s540_s18 = scalar_lea.sflag [#allocation4], %s237_s9 }
 0x6bb   : > { %v530_v0 = vsub.f32 %v523_v57, %v529_v63  ;;  %s796_s29 = scalar_lea.vmem %s1031_s19, 128  ;;  %s873_s11 = smov [#allocation3]  }
 0x6bc   : > { %p797_p13 = scmp.ne.s32.totalorder %s1031_s19, %s796_s29  ;;  %s800_s12 = sshll.u32 %s873_s11, 4  ;;  %s801_s12 = int_to_ptr.vmem [resolvable:$false] %s800_s12 }
 0x6bd   : > { %531 = vst.msk [vmem:[%s239_s16] sm:$0xff] %vm269_vm2, %v530_v0  ;;  %s802_s13 = scalar_lea.vmem %s801_s12, 256  ;;  %p803_p3 = scmp.lt.s32.totalorder %s1031_s19, %s801_s12 }
 0x6be   : > { %p798_p0 = pnand %p797_p13, %p949_p5  ;;  %p804_p4 = scmp.lt.s32.totalorder %s802_s13, %s796_s29 }
 0x6c0   : > { %p799_p1 = pneg %p798_p0  ;;  %p805_p7 = por %p804_p4, %p803_p3 }
 0x6c2   : > { %p806_p8 = pnand %p805_p7, %p799_p1 }
 0x6c4   : > { %809 = shalt.err (!%p806_p8)
}
 0x6c5   : > { %s810_s9 = scalar_lea.hbm %s1029_s28, 128  ;;  %s814_s14 = scalar_lea.hbm %s1085_s5, 1024 }
 0x6c6   : > { %p811_p9 = scmp.ne.s32.totalorder %s1029_s28, %s810_s9  ;;  %p815_p12 = scmp.lt.u32.totalorder %s1029_s28, %s1085_s5 }
 0x6c7   : > { %p816_p13 = scmp.lt.u32.totalorder %s814_s14, %s810_s9  ;;  %p818_p1 = scmp.lt.u32.totalorder %s810_s9, %s1029_s28 }
 0x6c8   : > { %p812_p10 = pnand %p811_p9, %p949_p5 }
 0x6c9   : > { %p817_p0 = por %p816_p13, %p815_p12 }
 0x6ca   : > { %p813_p11 = pneg %p812_p10 }
 0x6cb   : > { %p819_p3 = por %p818_p1, %p817_p0 }
 0x6cd   : > { %p820_p4 = pnand %p819_p3, %p813_p11 }
 0x6cf   : > { %823 = shalt.err (!%p820_p4)
}
 0x6d0   : > { %699 = dma.vmem_to_hbm [thread:$0]  (%p949_p5), %s1031_s19, 128, %s1029_s28, %s540_s18  }
 0x6d1   : > { %841 = dma.done.wait (%p149_p2), [#allocation6], 128  }
 0x6d2   : > { %843 = vsyncadd (%p149_p2), [#allocation6], 4294967168 }
 0x6d3 PF: > { %p711_p7 = scmp.ge.s32.totalorder %s862_s24, 2  ;;  %s580_s20 = sand.u32 1, %s850_s21  }
 0x6d4   : > { %s581_s26 = scalar_lea.sflag [#allocation4], %s580_s20 }
 0x6d5   : > { %p706_p8 = pnand %p711_p7, %p953_p6 }
 0x6d7   : > { %845 = dma.done.wait (!%p706_p8), %s581_s26, 128  }
 0x6d8   : > { %847 = vsyncadd (!%p706_p8), %s581_s26, 4294967168  ;;  %p18_p5 = scmp.ge.s32.totalorder %s934_s27, 10   ;;  %s1089_s21 = smov %s854_s22 }
 0x6d9   : > { %s1090_s22 = smov %s858_s23  ;;  %s1091_s23 = smov %s945_s30 }
 0x6da   : > { %s1092_s24 = smov %s934_s27  ;;  %20 = sbr.rel (!%p18_p5) target bundleno = 4 (0x4), region = 87 }
 0x6e1   :  { %586 = vsyncpa [#allocation4], 1 }
 0x6e2   :  { %588 = vsyncpa [#allocation4 + $0x1], 1 }
 0x6e3   :  { %589 = vsyncpa [#allocation6], 1 }

</bundles_post_ra>
